<compile_context>
chip_gen: v6e
topology: v6e:2x2x1
jax: 0.10.0
libtpu: 0.0.40
codegen_flags: <defaults>
</compile_context>

<pallas_src>
import functools

import jax
import jax.numpy as jnp
from jax.experimental import pallas as pl
from jax.experimental.pallas import tpu as pltpu


def _round_up(x: int, m: int) -> int:
  return ((x + m - 1) // m) * m


def _elman_kernel(x_ref, wt_ref, ut_ref, b_ref, h0_ref, o_ref, h_scratch,
                  *, tc: int, bp: int):
  """One grid step == one chunk of `tc` time steps of the recurrence.

  x_ref:  (tc*bp, InP)   time-major flattened inputs for this chunk
  wt_ref: (InP, OutP)    W^T  (zero-padded)
  ut_ref: (OutP, OutP)   U^T  (zero-padded)
  b_ref:  (1, OutP)      bias (zero-padded)
  h0_ref: (bp, OutP)     initial hidden state (zero-padded)
  o_ref:  (tc*bp, OutP)  hidden states for this chunk (time-major, flattened)
  h_scratch: (bp, OutP) f32  hidden state carried across grid steps
  """
  c = pl.program_id(0)

  @pl.when(c == 0)
  def _():
    h_scratch[...] = h0_ref[...]

  # Fused fc_x2h for the whole chunk: one big MXU GEMM, staged in o_ref.
  o_ref[...] = (
      jnp.dot(x_ref[...], wt_ref[...], preferred_element_type=jnp.float32)
      + b_ref[...])

  ut = ut_ref[...]  # hoist weight load out of the unrolled loop

  def step(t, h_prev):
    r0 = pl.multiple_of(t * bp, bp)
    x2h_t = o_ref[pl.ds(r0, bp), :]
    h_t = jnp.tanh(
        x2h_t + jnp.dot(h_prev, ut, preferred_element_type=jnp.float32))
    o_ref[pl.ds(r0, bp), :] = h_t
    return h_t

  h_last = jax.lax.fori_loop(0, tc, step, h_scratch[...], unroll=True)
  h_scratch[...] = h_last


def elman_net_layer(x, W, U, b, h_0=None, *, time_chunk: int = 16):
  """Pallas forward pass.

  x: (B, S, in_feat) float32
  W: (out_feat, in_feat)   fc_x2h.weight
  U: (out_feat, out_feat)  fc_h2h.weight
  b: (out_feat,)           fc_x2h.bias
  h_0: optional (B, out_feat) or (1, out_feat); defaults to zeros.
  Returns (B, S, out_feat) float32.
  """
  B, S, in_feat = x.shape
  out_feat = W.shape[0]

  if h_0 is None:
    h_0 = jnp.zeros((B, out_feat), dtype=jnp.float32)
  h_0 = jnp.asarray(h_0, jnp.float32)
  if h_0.shape[0] == 1 and B > 1:  # registered-buffer convention (1, out)
    h_0 = jnp.broadcast_to(h_0, (B, out_feat))

  # --- Padding for full-vreg tiles ------------------------------------------
  Bp = _round_up(max(B, 8), 8)                 # sublane-aligned batch
  InP = _round_up(max(in_feat, 128), 128)      # lane-aligned input dim
  OutP = _round_up(max(out_feat, 128), 128)    # lane-aligned hidden dim
  tc = max(1, min(time_chunk, S))              # time steps per grid iteration
  S_pad = pl.cdiv(S, tc) * tc

  # Time-major, padded, then flattened to (S_pad*Bp, InP): kernel blocks are
  # plain 2-D full-tile slabs, no reshapes/relayouts inside the kernel.
  # Padded batch rows / time steps never contaminate real rows: the recurrence
  # is row-independent and padded time steps come after all real ones.  Padded
  # lanes stay zero because the padded rows/cols of W^T, U^T and b are zero.
  x_tm = jnp.transpose(x.astype(jnp.float32), (1, 0, 2))          # (S, B, in)
  x_p = jnp.zeros((S_pad, Bp, InP), jnp.float32)
  x_p = x_p.at[:S, :B, :in_feat].set(x_tm).reshape(S_pad * Bp, InP)

  wt_p = jnp.zeros((InP, OutP), jnp.float32)
  wt_p = wt_p.at[:in_feat, :out_feat].set(W.astype(jnp.float32).T)
  ut_p = jnp.zeros((OutP, OutP), jnp.float32)
  ut_p = ut_p.at[:out_feat, :out_feat].set(U.astype(jnp.float32).T)
  b_p = jnp.zeros((1, OutP), jnp.float32)
  b_p = b_p.at[0, :out_feat].set(b.astype(jnp.float32))
  h0_p = jnp.zeros((Bp, OutP), jnp.float32)
  h0_p = h0_p.at[:B, :out_feat].set(h_0)

  grid = (S_pad // tc,)

  out_flat = pl.pallas_call(
      functools.partial(_elman_kernel, tc=tc, bp=Bp),
      out_shape=jax.ShapeDtypeStruct((S_pad * Bp, OutP), jnp.float32),
      grid_spec=pltpu.PrefetchScalarGridSpec(
          num_scalar_prefetch=0,
          grid=grid,
          in_specs=[
              pl.BlockSpec((tc * Bp, InP), lambda c: (c, 0)),   # x chunk
              pl.BlockSpec((InP, OutP), lambda c: (0, 0)),      # W^T
              pl.BlockSpec((OutP, OutP), lambda c: (0, 0)),     # U^T
              pl.BlockSpec((1, OutP), lambda c: (0, 0)),        # bias
              pl.BlockSpec((Bp, OutP), lambda c: (0, 0)),       # h_0
          ],
          out_specs=pl.BlockSpec((tc * Bp, OutP), lambda c: (c, 0)),
          scratch_shapes=[pltpu.VMEM((Bp, OutP), jnp.float32)],
      ),
      compiler_params=pltpu.CompilerParams(
          # time-chunk axis is a recurrence -> must run sequentially
          dimension_semantics=("arbitrary",),
      ),
  )(x_p, wt_p, ut_p, b_p, h0_p)

  # Strip padding and go back to the PyTorch (B, S, out) convention.
  out_tm = out_flat.reshape(S_pad, Bp, OutP)[:S, :B, :out_feat]
  return jnp.transpose(out_tm, (1, 0, 2))


def _elman_reference(x, W, U, b, h_0):
  """Pure-JAX reference mirroring the PyTorch loop."""
  x2h = jnp.einsum("bsi,oi->bso", x, W) + b  # fc_x2h

  def step(h_prev, x2h_t):
    h_cur = jnp.tanh(x2h_t + h_prev @ U.T)
    return h_cur, h_cur

  _, hs = jax.lax.scan(step, h_0, jnp.transpose(x2h, (1, 0, 2)))
  return jnp.transpose(hs, (1, 0, 2))


if __name__ == "__main__":
  # Module hyperparameters (small shapes consistent with (B, S, in_feat)).
  B, S = 2, 8
  in_feat, out_feat = 16, 32
  init_lower, init_upper = -0.1, 0.1

  key = jax.random.PRNGKey(0)
  kx, kw, ku, kb = jax.random.split(key, 4)

  # Deterministic parameter init, matching params_init(): U(init_lower, init_upper).
  W = jax.random.uniform(kw, (out_feat, in_feat), jnp.float32, init_lower, init_upper)
  U = jax.random.uniform(ku, (out_feat, out_feat), jnp.float32, init_lower, init_upper)
  b = jax.random.uniform(kb, (out_feat,), jnp.float32, init_lower, init_upper)

  x = jax.random.normal(kx, (B, S, in_feat), jnp.float32)
  h_0 = jnp.zeros((B, out_feat), jnp.float32)  # registered buffer default

  out = elman_net_layer(x, W, U, b, h_0)
  out = jax.block_until_ready(out)

  ref = _elman_reference(x, W, U, b, h_0)
  assert out.shape == (B, S, out_feat)
  assert jnp.allclose(out, ref, atol=1e-4, rtol=1e-4), "mismatch vs reference"

  print("KERNEL_OK")
</pallas_src>

<mosaic_0001>
module attributes {stable_mosaic.version = 11 : i64} {
  func.func @_elman_kernel(%arg0: i32, %arg1: memref<64x128xf32, #tpu.memory_space<vmem>>, %arg2: memref<128x128xf32, #tpu.memory_space<vmem>>, %arg3: memref<128x128xf32, #tpu.memory_space<vmem>>, %arg4: memref<1x128xf32, #tpu.memory_space<vmem>>, %arg5: memref<8x128xf32, #tpu.memory_space<vmem>>, %arg6: memref<64x128xf32, #tpu.memory_space<vmem>>, %arg7: memref<8x128xf32, #tpu.memory_space<vmem>>) attributes {dimension_semantics = [#tpu.dimension_semantics<arbitrary>], iteration_bounds = array<i64: 1>, scalar_prefetch = 0 : i64, scratch_operands = 1 : i64, tpu.core_type = #tpu.core_type<tc>, window_params = [{transform_indices = @transform_0, window_bounds = array<i64: 64, 128>}, {pipeline_mode = #tpu.pipeline_mode<synchronous>, transform_indices = @transform_1, window_bounds = array<i64: 128, 128>}, {pipeline_mode = #tpu.pipeline_mode<synchronous>, transform_indices = @transform_2, window_bounds = array<i64: 128, 128>}, {pipeline_mode = #tpu.pipeline_mode<synchronous>, transform_indices = @transform_3, window_bounds = array<i64: 1, 128>}, {pipeline_mode = #tpu.pipeline_mode<synchronous>, transform_indices = @transform_4, window_bounds = array<i64: 8, 128>}, {transform_indices = @transform_5, window_bounds = array<i64: 64, 128>}]} {
    %c0_i32 = arith.constant 0 : i32
    %0 = arith.cmpi eq, %arg0, %c0_i32 : i32
    %1 = arith.extui %0 : i1 to i32
    %c0_i32_0 = arith.constant 0 : i32
    %2 = arith.cmpi ne, %1, %c0_i32_0 : i32
    scf.if %2 {
      %c0_47 = arith.constant 0 : index
      %c0_48 = arith.constant 0 : index
      %85 = vector.load %arg5[%c0_47, %c0_48] : memref<8x128xf32, #tpu.memory_space<vmem>>, vector<8x128xf32>
      %c0_49 = arith.constant 0 : index
      %c0_50 = arith.constant 0 : index
      %86 = vector.load %arg7[%c0_49, %c0_50] : memref<8x128xf32, #tpu.memory_space<vmem>>, vector<8x128xf32>
      tpu.vector_store %arg7[%c0_49, %c0_50], %85 {strides = array<i32>} : memref<8x128xf32, #tpu.memory_space<vmem>>, vector<8x128xf32>,
    } else {
    }
    %c0 = arith.constant 0 : index
    %c0_1 = arith.constant 0 : index
    %3 = vector.load %arg1[%c0, %c0_1] : memref<64x128xf32, #tpu.memory_space<vmem>>, vector<64x128xf32>
    %c0_2 = arith.constant 0 : index
    %c0_3 = arith.constant 0 : index
    %4 = vector.load %arg2[%c0_2, %c0_3] : memref<128x128xf32, #tpu.memory_space<vmem>>, vector<128x128xf32>
    %cst = arith.constant dense<0.000000e+00> : vector<64x128xf32>
    %5 = tpu.matmul %3, %4, %cst {dimension_numbers = #tpu.dot_dimension_numbers<[1], [0], [0], [1], [0, 0, 1, 1], [], []>} : vector<64x128xf32>, vector<128x128xf32>, vector<64x128xf32> -> vector<64x128xf32>
    %c0_4 = arith.constant 0 : index
    %c0_5 = arith.constant 0 : index
    %6 = vector.load %arg4[%c0_4, %c0_5] : memref<1x128xf32, #tpu.memory_space<vmem>>, vector<1x128xf32>
    %7 = vector.broadcast %6 : vector<1x128xf32> to vector<64x128xf32>
    %8 = arith.addf %5, %7 : vector<64x128xf32>
    %c0_6 = arith.constant 0 : index
    %c0_7 = arith.constant 0 : index
    %9 = vector.load %arg6[%c0_6, %c0_7] : memref<64x128xf32, #tpu.memory_space<vmem>>, vector<64x128xf32>
    tpu.vector_store %arg6[%c0_6, %c0_7], %8 {strides = array<i32>} : memref<64x128xf32, #tpu.memory_space<vmem>>, vector<64x128xf32>,
    %c0_8 = arith.constant 0 : index
    %c0_9 = arith.constant 0 : index
    %10 = vector.load %arg3[%c0_8, %c0_9] : memref<128x128xf32, #tpu.memory_space<vmem>>, vector<128x128xf32>
    %c0_10 = arith.constant 0 : index
    %c0_11 = arith.constant 0 : index
    %11 = vector.load %arg7[%c0_10, %c0_11] : memref<8x128xf32, #tpu.memory_space<vmem>>, vector<8x128xf32>
    %c0_i32_12 = arith.constant 0 : i32
    %c8_i32 = arith.constant 8 : i32
    %12 = arith.muli %c0_i32_12, %c8_i32 : i32
    %13 = tpu.assume_multiple %12, 8 : i32
    %14 = arith.index_cast %13 : i32 to index
    %c0_13 = arith.constant 0 : index
    %15 = vector.load %arg6[%14, %c0_13] : memref<64x128xf32, #tpu.memory_space<vmem>>, vector<8x128xf32>
    %cst_14 = arith.constant dense<0.000000e+00> : vector<8x128xf32>
    %16 = tpu.matmul %11, %10, %cst_14 {dimension_numbers = #tpu.dot_dimension_numbers<[1], [0], [0], [1], [0, 0, 1, 1], [], []>} : vector<8x128xf32>, vector<128x128xf32>, vector<8x128xf32> -> vector<8x128xf32>
    %17 = arith.addf %15, %16 : vector<8x128xf32>
    %18 = math.tanh %17 : vector<8x128xf32>
    %19 = arith.index_cast %13 : i32 to index
    %c0_15 = arith.constant 0 : index
    %20 = vector.load %arg6[%19, %c0_15] : memref<64x128xf32, #tpu.memory_space<vmem>>, vector<8x128xf32>
    tpu.vector_store %arg6[%19, %c0_15], %18 {strides = array<i32>} : memref<64x128xf32, #tpu.memory_space<vmem>>, vector<8x128xf32>,
    %c1_i32 = arith.constant 1 : i32
    %c8_i32_16 = arith.constant 8 : i32
    %21 = arith.muli %c1_i32, %c8_i32_16 : i32
    %22 = tpu.assume_multiple %21, 8 : i32
    %23 = arith.index_cast %22 : i32 to index
    %c0_17 = arith.constant 0 : index
    %24 = vector.load %arg6[%23, %c0_17] : memref<64x128xf32, #tpu.memory_space<vmem>>, vector<8x128xf32>
    %cst_18 = arith.constant dense<0.000000e+00> : vector<8x128xf32>
    %25 = tpu.matmul %18, %10, %cst_18 {dimension_numbers = #tpu.dot_dimension_numbers<[1], [0], [0], [1], [0, 0, 1, 1], [], []>} : vector<8x128xf32>, vector<128x128xf32>, vector<8x128xf32> -> vector<8x128xf32>
    %26 = arith.addf %24, %25 : vector<8x128xf32>
    %27 = math.tanh %26 : vector<8x128xf32>
    %28 = arith.index_cast %22 : i32 to index
    %c0_19 = arith.constant 0 : index
    %29 = vector.load %arg6[%28, %c0_19] : memref<64x128xf32, #tpu.memory_space<vmem>>, vector<8x128xf32>
    tpu.vector_store %arg6[%28, %c0_19], %27 {strides = array<i32>} : memref<64x128xf32, #tpu.memory_space<vmem>>, vector<8x128xf32>,
    %c2_i32 = arith.constant 2 : i32
    %c8_i32_20 = arith.constant 8 : i32
    %30 = arith.muli %c2_i32, %c8_i32_20 : i32
    %31 = tpu.assume_multiple %30, 8 : i32
    %32 = arith.index_cast %31 : i32 to index
    %c0_21 = arith.constant 0 : index
    %33 = vector.load %arg6[%32, %c0_21] : memref<64x128xf32, #tpu.memory_space<vmem>>, vector<8x128xf32>
    %cst_22 = arith.constant dense<0.000000e+00> : vector<8x128xf32>
    %34 = tpu.matmul %27, %10, %cst_22 {dimension_numbers = #tpu.dot_dimension_numbers<[1], [0], [0], [1], [0, 0, 1, 1], [], []>} : vector<8x128xf32>, vector<128x128xf32>, vector<8x128xf32> -> vector<8x128xf32>
    %35 = arith.addf %33, %34 : vector<8x128xf32>
    %36 = math.tanh %35 : vector<8x128xf32>
    %37 = arith.index_cast %31 : i32 to index
    %c0_23 = arith.constant 0 : index
    %38 = vector.load %arg6[%37, %c0_23] : memref<64x128xf32, #tpu.memory_space<vmem>>, vector<8x128xf32>
    tpu.vector_store %arg6[%37, %c0_23], %36 {strides = array<i32>} : memref<64x128xf32, #tpu.memory_space<vmem>>, vector<8x128xf32>,
    %c3_i32 = arith.constant 3 : i32
    %c8_i32_24 = arith.constant 8 : i32
    %39 = arith.muli %c3_i32, %c8_i32_24 : i32
    %40 = tpu.assume_multiple %39, 8 : i32
    %41 = arith.index_cast %40 : i32 to index
    %c0_25 = arith.constant 0 : index
    %42 = vector.load %arg6[%41, %c0_25] : memref<64x128xf32, #tpu.memory_space<vmem>>, vector<8x128xf32>
    %cst_26 = arith.constant dense<0.000000e+00> : vector<8x128xf32>
    %43 = tpu.matmul %36, %10, %cst_26 {dimension_numbers = #tpu.dot_dimension_numbers<[1], [0], [0], [1], [0, 0, 1, 1], [], []>} : vector<8x128xf32>, vector<128x128xf32>, vector<8x128xf32> -> vector<8x128xf32>
    %44 = arith.addf %42, %43 : vector<8x128xf32>
    %45 = math.tanh %44 : vector<8x128xf32>
    %46 = arith.index_cast %40 : i32 to index
    %c0_27 = arith.constant 0 : index
    %47 = vector.load %arg6[%46, %c0_27] : memref<64x128xf32, #tpu.memory_space<vmem>>, vector<8x128xf32>
    tpu.vector_store %arg6[%46, %c0_27], %45 {strides = array<i32>} : memref<64x128xf32, #tpu.memory_space<vmem>>, vector<8x128xf32>,
    %c4_i32 = arith.constant 4 : i32
    %c8_i32_28 = arith.constant 8 : i32
    %48 = arith.muli %c4_i32, %c8_i32_28 : i32
    %49 = tpu.assume_multiple %48, 8 : i32
    %50 = arith.index_cast %49 : i32 to index
    %c0_29 = arith.constant 0 : index
    %51 = vector.load %arg6[%50, %c0_29] : memref<64x128xf32, #tpu.memory_space<vmem>>, vector<8x128xf32>
    %cst_30 = arith.constant dense<0.000000e+00> : vector<8x128xf32>
    %52 = tpu.matmul %45, %10, %cst_30 {dimension_numbers = #tpu.dot_dimension_numbers<[1], [0], [0], [1], [0, 0, 1, 1], [], []>} : vector<8x128xf32>, vector<128x128xf32>, vector<8x128xf32> -> vector<8x128xf32>
    %53 = arith.addf %51, %52 : vector<8x128xf32>
    %54 = math.tanh %53 : vector<8x128xf32>
    %55 = arith.index_cast %49 : i32 to index
    %c0_31 = arith.constant 0 : index
    %56 = vector.load %arg6[%55, %c0_31] : memref<64x128xf32, #tpu.memory_space<vmem>>, vector<8x128xf32>
    tpu.vector_store %arg6[%55, %c0_31], %54 {strides = array<i32>} : memref<64x128xf32, #tpu.memory_space<vmem>>, vector<8x128xf32>,
    %c5_i32 = arith.constant 5 : i32
    %c8_i32_32 = arith.constant 8 : i32
    %57 = arith.muli %c5_i32, %c8_i32_32 : i32
    %58 = tpu.assume_multiple %57, 8 : i32
    %59 = arith.index_cast %58 : i32 to index
    %c0_33 = arith.constant 0 : index
    %60 = vector.load %arg6[%59, %c0_33] : memref<64x128xf32, #tpu.memory_space<vmem>>, vector<8x128xf32>
    %cst_34 = arith.constant dense<0.000000e+00> : vector<8x128xf32>
    %61 = tpu.matmul %54, %10, %cst_34 {dimension_numbers = #tpu.dot_dimension_numbers<[1], [0], [0], [1], [0, 0, 1, 1], [], []>} : vector<8x128xf32>, vector<128x128xf32>, vector<8x128xf32> -> vector<8x128xf32>
    %62 = arith.addf %60, %61 : vector<8x128xf32>
    %63 = math.tanh %62 : vector<8x128xf32>
    %64 = arith.index_cast %58 : i32 to index
    %c0_35 = arith.constant 0 : index
    %65 = vector.load %arg6[%64, %c0_35] : memref<64x128xf32, #tpu.memory_space<vmem>>, vector<8x128xf32>
    tpu.vector_store %arg6[%64, %c0_35], %63 {strides = array<i32>} : memref<64x128xf32, #tpu.memory_space<vmem>>, vector<8x128xf32>,
    %c6_i32 = arith.constant 6 : i32
    %c8_i32_36 = arith.constant 8 : i32
    %66 = arith.muli %c6_i32, %c8_i32_36 : i32
    %67 = tpu.assume_multiple %66, 8 : i32
    %68 = arith.index_cast %67 : i32 to index
    %c0_37 = arith.constant 0 : index
    %69 = vector.load %arg6[%68, %c0_37] : memref<64x128xf32, #tpu.memory_space<vmem>>, vector<8x128xf32>
    %cst_38 = arith.constant dense<0.000000e+00> : vector<8x128xf32>
    %70 = tpu.matmul %63, %10, %cst_38 {dimension_numbers = #tpu.dot_dimension_numbers<[1], [0], [0], [1], [0, 0, 1, 1], [], []>} : vector<8x128xf32>, vector<128x128xf32>, vector<8x128xf32> -> vector<8x128xf32>
    %71 = arith.addf %69, %70 : vector<8x128xf32>
    %72 = math.tanh %71 : vector<8x128xf32>
    %73 = arith.index_cast %67 : i32 to index
    %c0_39 = arith.constant 0 : index
    %74 = vector.load %arg6[%73, %c0_39] : memref<64x128xf32, #tpu.memory_space<vmem>>, vector<8x128xf32>
    tpu.vector_store %arg6[%73, %c0_39], %72 {strides = array<i32>} : memref<64x128xf32, #tpu.memory_space<vmem>>, vector<8x128xf32>,
    %c7_i32 = arith.constant 7 : i32
    %c8_i32_40 = arith.constant 8 : i32
    %75 = arith.muli %c7_i32, %c8_i32_40 : i32
    %76 = tpu.assume_multiple %75, 8 : i32
    %77 = arith.index_cast %76 : i32 to index
    %c0_41 = arith.constant 0 : index
    %78 = vector.load %arg6[%77, %c0_41] : memref<64x128xf32, #tpu.memory_space<vmem>>, vector<8x128xf32>
    %cst_42 = arith.constant dense<0.000000e+00> : vector<8x128xf32>
    %79 = tpu.matmul %72, %10, %cst_42 {dimension_numbers = #tpu.dot_dimension_numbers<[1], [0], [0], [1], [0, 0, 1, 1], [], []>} : vector<8x128xf32>, vector<128x128xf32>, vector<8x128xf32> -> vector<8x128xf32>
    %80 = arith.addf %78, %79 : vector<8x128xf32>
    %81 = math.tanh %80 : vector<8x128xf32>
    %82 = arith.index_cast %76 : i32 to index
    %c0_43 = arith.constant 0 : index
    %83 = vector.load %arg6[%82, %c0_43] : memref<64x128xf32, #tpu.memory_space<vmem>>, vector<8x128xf32>
    tpu.vector_store %arg6[%82, %c0_43], %81 {strides = array<i32>} : memref<64x128xf32, #tpu.memory_space<vmem>>, vector<8x128xf32>,
    %c8_i32_44 = arith.constant 8 : i32
    %c0_45 = arith.constant 0 : index
    %c0_46 = arith.constant 0 : index
    %84 = vector.load %arg7[%c0_45, %c0_46] : memref<8x128xf32, #tpu.memory_space<vmem>>, vector<8x128xf32>
    tpu.vector_store %arg7[%c0_45, %c0_46], %81 {strides = array<i32>} : memref<8x128xf32, #tpu.memory_space<vmem>>, vector<8x128xf32>,
    return
  }
  func.func @transform_0(%arg0: i32) -> (i32, i32) {
    %c0_i32 = arith.constant 0 : i32
    %c0_i32_0 = arith.constant 0 : i32
    return %arg0, %c0_i32 : i32, i32
  }
  func.func @transform_1(%arg0: i32) -> (i32, i32) {
    %c0_i32 = arith.constant 0 : i32
    %c0_i32_0 = arith.constant 0 : i32
    %c0_i32_1 = arith.constant 0 : i32
    return %c0_i32, %c0_i32_0 : i32, i32
  }
  func.func @transform_2(%arg0: i32) -> (i32, i32) {
    %c0_i32 = arith.constant 0 : i32
    %c0_i32_0 = arith.constant 0 : i32
    %c0_i32_1 = arith.constant 0 : i32
    return %c0_i32, %c0_i32_0 : i32, i32
  }
  func.func @transform_3(%arg0: i32) -> (i32, i32) {
    %c0_i32 = arith.constant 0 : i32
    %c0_i32_0 = arith.constant 0 : i32
    %c0_i32_1 = arith.constant 0 : i32
    return %c0_i32, %c0_i32_0 : i32, i32
  }
  func.func @transform_4(%arg0: i32) -> (i32, i32) {
    %c0_i32 = arith.constant 0 : i32
    %c0_i32_0 = arith.constant 0 : i32
    %c0_i32_1 = arith.constant 0 : i32
    return %c0_i32, %c0_i32_0 : i32, i32
  }
  func.func @transform_5(%arg0: i32) -> (i32, i32) {
    %c0_i32 = arith.constant 0 : i32
    %c0_i32_0 = arith.constant 0 : i32
    return %arg0, %c0_i32 : i32, i32
  }
}

</mosaic_0001>

<bundles_post_ra>
// kernel: tpu_custom_call.1
= control target key start
LH: loop header
LB: loop body
LE: loop exit
PB: predicated region body
PF: predicated region fallthrough
CT: control target
= control target key end

     0   :  { %10 = vsyncpa [#allocation4], 0  ;;  %s1876_s0 = inlined_call_operand.hbm [shape: f32[64,128], index: 0, kind: input, shape index: {}]   ;;  %s1877_s1 = inlined_call_operand.hbm [shape: f32[128,128], index: 1, kind: input, shape index: {}]   ;;  %s1878_s2 = inlined_call_operand.hbm [shape: f32[128,128], index: 2, kind: input, shape index: {}]   ;;  %s1879_s3 = inlined_call_operand.vmem [shape: f32[1,128], index: 3, kind: input, shape index: {}]   ;;  %s1880_s4 = inlined_call_operand.hbm [shape: f32[8,128], index: 4, kind: input, shape index: {}]   ;;  %s1881_s5 = inlined_call_operand.hbm [shape: f32[64,128], index: 5, kind: output, shape index: {}]  }
   0x1   :  { %11 = vsyncpa [#allocation7], 0 }
   0x2   :  { %12 = vsyncpa [#allocation10], 0 }
   0x3   :  { %13 = vsyncpa [#allocation5], 0  ;;  %s1478_s18 = smov [#allocation6]   ;;  %s1479_s20 = smov [#allocation3]  }
   0x4   :  { %s31_s19 = sshll.u32 %s1478_s18, 4  ;;  %s19_s21 = sshll.u32 %s1479_s20, 4  ;;  %s32_s19 = int_to_ptr.vmem [resolvable:$true] %s31_s19  ;;  %s20_s21 = int_to_ptr.vmem [resolvable:$true] %s19_s21 }
   0x5   :  { %s1378_s22 = scalar_lea.vmem %s32_s19, 2048  ;;  %p1383_p1 = scmp.lt.s32.totalorder %s32_s19, %s32_s19 }
   0x6   :  { %p1379_p0 = scmp.ne.s32.totalorder %s32_s19, %s1378_s22  ;;  %p1384_p2 = scmp.lt.s32.totalorder %s1378_s22, %s1378_s22 }
   0x8   :  { %p1385_p3 = por %p1384_p2, %p1383_p1 }
   0xa   :  { %p1386_p4 = pnand %p1385_p3, %p1379_p0 }
   0xc   :  { %1389 = shalt.err (!%p1386_p4)
}
   0xd   :  { %s1480_s23 = smov 128   ;;  %s1481_s24 = smov 8  }
   0xe   :  { %37 = dma.hbm_to_vmem [thread:$0]  %s1877_s1, 2048, %s32_s19, [#allocation7], %s1480_s23, %s1480_s23, %s1481_s24  }
   0xf   :  { %s1398_s27 = scalar_lea.vmem %s20_s21, 1024  ;;  %p1403_p6 = scmp.lt.s32.totalorder %s20_s21, %s20_s21 }
  0x10   :  { %p1399_p5 = scmp.ne.s32.totalorder %s20_s21, %s1398_s27  ;;  %p1404_p7 = scmp.lt.s32.totalorder %s1398_s27, %s1398_s27 }
  0x12   :  { %p1405_p8 = por %p1404_p7, %p1403_p6 }
  0x14   :  { %p1406_p9 = pnand %p1405_p8, %p1399_p5 }
  0x16   :  { %1409 = shalt.err (!%p1406_p9)
}
  0x17   :  { %25 = dma.hbm_to_vmem [thread:$0]  %s1876_s0, 1024, %s20_s21, [#allocation4], %s1480_s23, %s1480_s23, %s1481_s24  }
  0x18   :  { %s1482_s30 = smov [#allocation8]   ;;  %s1483_s7 = smov [#allocation9]  }
  0x19   :  { %s43_s6 = sshll.u32 %s1482_s30, 4  ;;  %s58_s8 = sshll.u32 %s1483_s7, 4  ;;  %s44_s6 = int_to_ptr.vmem [resolvable:$true] %s43_s6  ;;  %s59_s8 = int_to_ptr.vmem [resolvable:$true] %s58_s8 }
  0x1a   :  { %s1418_s1 = scalar_lea.vmem %s44_s6, 2048  ;;  %p1423_p11 = scmp.lt.s32.totalorder %s44_s6, %s44_s6 }
  0x1b   :  { %p1419_p10 = scmp.ne.s32.totalorder %s44_s6, %s1418_s1  ;;  %p1424_p12 = scmp.lt.s32.totalorder %s1418_s1, %s1418_s1 }
  0x1d   :  { %p1425_p13 = por %p1424_p12, %p1423_p11 }
  0x1f   :  { %p1426_p0 = pnand %p1425_p13, %p1419_p10 }
  0x21   :  { %1429 = shalt.err (!%p1426_p0)
}
  0x22   :  { %49 = dma.hbm_to_vmem [thread:$0]  %s1878_s2, 2048, %s44_s6, [#allocation7], %s1480_s23, %s1480_s23, %s1481_s24  }
  0x23   :  { %s1438_s0 = scalar_lea.vmem %s59_s8, 128  ;;  %p1443_p2 = scmp.lt.s32.totalorder %s59_s8, %s59_s8 }
  0x24   :  { %p1439_p1 = scmp.ne.s32.totalorder %s59_s8, %s1438_s0  ;;  %p1444_p3 = scmp.lt.s32.totalorder %s1438_s0, %s1438_s0 }
  0x26   :  { %p1445_p4 = por %p1444_p3, %p1443_p2 }
  0x28   :  { %p1446_p5 = pnand %p1445_p4, %p1439_p1 }
  0x2a   :  { %1449 = shalt.err (!%p1446_p5)
}
  0x2b   :  { %61 = dma.hbm_to_vmem [thread:$0]  %s1880_s4, 128, %s59_s8, [#allocation10]  }
  0x2c   :  { %1470 = dma.done.wait [#allocation4], 1024  }
  0x2d   :  { %1471 = vsyncadd [#allocation4], 4294966272 }
  0x2e   :  { %1472 = dma.done.wait [#allocation7], 4096  }
  0x2f   :  { %1473 = vsyncadd [#allocation7], 4294963200 }
  0x30   :  { %1474 = dma.done.wait [#allocation10], 128  }
  0x31   :  { %1475 = vsyncadd [#allocation10], 4294967168  ;;  %v1484_v0 = vmov 0.0   ;;  %vm1485_vm0 = vmmov 0   ;;  %v103_v1 = vld [vmem:[#allocation6 + $0x78] sm:$0xff]  ;;  %v102_v2 = vld [vmem:[#allocation6 + $0x70] sm:$0xff] }
  0x32   :  { %1065 = vmatprep.subr.mxu1 %v1484_v0  ;;  %1097 = vmatprep.mubr.msk.f32.mxu1 %vm1485_vm0, %v1484_v0  ;;  %v101_v3 = vld [vmem:[#allocation6 + $0x68] sm:$0xff]  ;;  %v1541_v4 = vld [vmem:[#allocation8 + $0x78] sm:$0xff]  ;;  %v1543_v5 = vld [vmem:[#allocation8 + $0x70] sm:$0xff] }
  0x33   :  { %1021 = vmatprep.subr.mxu0 %v103_v1  ;;  %1066 = vmatpush3.msra.mxu1 %v1541_v4  ;;  %v100_v6 = vld [vmem:[#allocation6 + $0x60] sm:$0xff]  ;;  %v1547_v7 = vld [vmem:[#allocation8 + $0x68] sm:$0xff]  ;;  %v99_v8 = vld [vmem:[#allocation6 + $0x58] sm:$0xff] }
  0x34   :  { %1022 = vmatpush3.msra.mxu0 %v103_v1  ;;  %1067 = vmatprep.subr.mxu1 %v1484_v0  ;;  %v1551_v9 = vld [vmem:[#allocation8 + $0x60] sm:$0xff]  ;;  %v98_v10 = vld [vmem:[#allocation6 + $0x50] sm:$0xff]  ;;  %v1555_v11 = vld [vmem:[#allocation8 + $0x58] sm:$0xff] }
  0x35   :  { %1023 = vmatprep.subr.mxu0 %v102_v2  ;;  %1068 = vmatpush3.msra.mxu1 %v1543_v5  ;;  %v97_v12 = vld [vmem:[#allocation6 + $0x48] sm:$0xff]  ;;  %v1559_v13 = vld [vmem:[#allocation8 + $0x50] sm:$0xff]  ;;  %v96_v14 = vld [vmem:[#allocation6 + $0x40] sm:$0xff] }
  0x36   :  { %1024 = vmatpush3.msra.mxu0 %v102_v2  ;;  %1069 = vmatprep.subr.mxu1 %v1484_v0  ;;  %v1563_v15 = vld [vmem:[#allocation8 + $0x48] sm:$0xff]  ;;  %v95_v16 = vld [vmem:[#allocation6 + $0x38] sm:$0xff]  ;;  %v1567_v17 = vld [vmem:[#allocation8 + $0x40] sm:$0xff] }
  0x37   :  { %1025 = vmatprep.subr.mxu0 %v101_v3  ;;  %1070 = vmatpush3.msra.mxu1 %v1547_v7  ;;  %v94_v18 = vld [vmem:[#allocation6 + $0x30] sm:$0xff]  ;;  %v1571_v19 = vld [vmem:[#allocation8 + $0x38] sm:$0xff]  ;;  %v93_v20 = vld [vmem:[#allocation6 + $0x28] sm:$0xff] }
  0x38   :  { %1026 = vmatpush3.msra.mxu0 %v101_v3  ;;  %1071 = vmatprep.subr.mxu1 %v1484_v0  ;;  %v1575_v21 = vld [vmem:[#allocation8 + $0x30] sm:$0xff]  ;;  %v92_v22 = vld [vmem:[#allocation6 + $0x20] sm:$0xff]  ;;  %v1580_v24 = vld [vmem:[#allocation8 + $0x28] sm:$0xff] }
  0x39   :  { %1027 = vmatprep.subr.mxu0 %v100_v6  ;;  %1072 = vmatpush3.msra.mxu1 %v1551_v9  ;;  %v80_v23 = vld [vmem:[#allocation3] sm:$0xff]  ;;  %v91_v25 = vld [vmem:[#allocation6 + $0x18] sm:$0xff]  ;;  %v90_v27 = vld [vmem:[#allocation6 + $0x10] sm:$0xff] }
  0x3a   :  { %1028 = vmatpush3.msra.mxu0 %v100_v6  ;;  %1073 = vmatprep.subr.mxu1 %v1484_v0  ;;  %v1583_v26 = vld [vmem:[#allocation8 + $0x20] sm:$0xff]  ;;  %v1587_v28 = vld [vmem:[#allocation8 + $0x18] sm:$0xff]  ;;  %v89_v29 = vld [vmem:[#allocation6 + $0x8] sm:$0xff] }
  0x3b   :  { %1029 = vmatprep.subr.mxu0 %v99_v8  ;;  %1074 = vmatpush3.msra.mxu1 %v1555_v11  ;;  %v1591_v30 = vld [vmem:[#allocation8 + $0x10] sm:$0xff]  ;;  %v88_v31 = vld [vmem:[#allocation6] sm:$0xff]  ;;  %v1595_v32 = vld [vmem:[#allocation8 + $0x8] sm:$0xff] }
  0x3c   :  { %1030 = vmatpush3.msra.mxu0 %v99_v8  ;;  %1075 = vmatprep.subr.mxu1 %v1484_v0  ;;  %v81_v33 = vld [vmem:[#allocation3 + $0x8] sm:$0xff]  ;;  %v1599_v34 = vld [vmem:[#allocation8] sm:$0xff]  ;;  %v82_v36 = vld [vmem:[#allocation3 + $0x10] sm:$0xff] }
  0x3d   :  { %1031 = vmatprep.subr.mxu0 %v98_v10  ;;  %1076 = vmatpush3.msra.mxu1 %v1559_v13  ;;  %v78_v35 = vld [vmem:[#allocation9] sm:$0xff]  ;;  %v83_v37 = vld [vmem:[#allocation3 + $0x18] sm:$0xff]  ;;  %v85_v39 = vld [vmem:[#allocation3 + $0x28] sm:$0xff] }
  0x3e   :  { %1032 = vmatpush3.msra.mxu0 %v98_v10  ;;  %1077 = vmatprep.subr.mxu1 %v1484_v0  ;;  %v84_v38 = vld [vmem:[#allocation3 + $0x20] sm:$0xff]  ;;  %v86_v40 = vld [vmem:[#allocation3 + $0x30] sm:$0xff]  ;;  %v87_v41 = vld [vmem:[#allocation3 + $0x38] sm:$0xff] }
  0x3f   :  { %1033 = vmatprep.subr.mxu0 %v97_v12  ;;  %1078 = vmatpush3.msra.mxu1 %v1563_v15  ;;  %v1677_v43 = vld [vmem:[%s1879_s3] ss:$0 sm:$0xff]  ;;  %s1486_s3 = smov [#allocation11]  }
  0x40   :  { %1034 = vmatpush3.msra.mxu0 %v97_v12  ;;  %1079 = vmatprep.subr.mxu1 %v1484_v0  ;;  %s846_s13 = sshll.u32 %s1486_s3, 4  ;;  %s847_s13 = int_to_ptr.vmem [resolvable:$true] %s846_s13 }
  0x41   :  { %1035 = vmatprep.subr.mxu0 %v96_v14  ;;  %1080 = vmatpush3.msra.mxu1 %v1567_v17  ;;  %s1450_s14 = scalar_lea.vmem %s847_s13, 1024  ;;  %p1455_p7 = scmp.lt.s32.totalorder %s847_s13, %s847_s13 }
  0x42   :  { %1036 = vmatpush3.msra.mxu0 %v96_v14  ;;  %1081 = vmatprep.subr.mxu1 %v1484_v0  ;;  %p1451_p6 = scmp.ne.s32.totalorder %s847_s13, %s1450_s14  ;;  %p1456_p8 = scmp.lt.s32.totalorder %s1450_s14, %s1450_s14 }
  0x43   :  { %1037 = vmatprep.subr.mxu0 %v95_v16  ;;  %1082 = vmatpush3.msra.mxu1 %v1571_v19 }
  0x44   :  { %1038 = vmatpush3.msra.mxu0 %v95_v16  ;;  %1083 = vmatprep.subr.mxu1 %v1484_v0  ;;  %p1457_p9 = por %p1456_p8, %p1455_p7 }
  0x45   :  { %1039 = vmatprep.subr.mxu0 %v94_v18  ;;  %1084 = vmatpush3.msra.mxu1 %v1575_v21 }
  0x46   :  { %1040 = vmatpush3.msra.mxu0 %v94_v18  ;;  %1085 = vmatprep.subr.mxu1 %v1484_v0  ;;  %p1458_p10 = pnand %p1457_p9, %p1451_p6 }
  0x47   :  { %1041 = vmatprep.subr.mxu0 %v93_v20  ;;  %1053 = vmatprep.mubr.f32.mxu0 %v80_v23 }
  0x48   :  { %1042 = vmatpush3.msra.mxu0 %v93_v20  ;;  %1086 = vmatpush3.msra.mxu1 %v1580_v24 }
  0x49   :  { %1043 = vmatprep.subr.mxu0 %v92_v22  ;;  %1087 = vmatprep.subr.mxu1 %v1484_v0 }
  0x4a   :  { %1044 = vmatpush3.msra.mxu0 %v92_v22  ;;  %1088 = vmatpush3.msra.mxu1 %v1583_v26 }
  0x4b   :  { %1045 = vmatprep.subr.mxu0 %v91_v25  ;;  %1089 = vmatprep.subr.mxu1 %v1484_v0 }
  0x4c   :  { %1046 = vmatpush3.msra.mxu0 %v91_v25  ;;  %1090 = vmatpush3.msra.mxu1 %v1587_v28 }
  0x4d   :  { %1047 = vmatprep.subr.mxu0 %v90_v27  ;;  %1091 = vmatprep.subr.mxu1 %v1484_v0 }
  0x4e   :  { %1048 = vmatpush3.msra.mxu0 %v90_v27  ;;  %1092 = vmatpush3.msra.mxu1 %v1591_v30 }
  0x4f   :  { %1049 = vmatprep.subr.mxu0 %v89_v29  ;;  %1093 = vmatprep.subr.mxu1 %v1484_v0 }
  0x50   :  { %1050 = vmatpush3.msra.mxu0 %v89_v29  ;;  %1094 = vmatpush3.msra.mxu1 %v1595_v32 }
  0x51   :  { %1051 = vmatprep.subr.mxu0 %v88_v31  ;;  %1095 = vmatprep.subr.mxu1 %v1484_v0 }
  0x52   :  { %1052 = vmatpush3.msra.mxu0 %v88_v31  ;;  %1096 = vmatpush3.msra.mxu1 %v1599_v34 }
  0x53   :  { %1054 = vmatmul.mubr.f32.vlgmr.msra.gmra.mxu0 %v81_v33  ;;  %1100 = vmatprep.subr.mxu0 %v1484_v0 }
  0x54   :  { %1098 = vmatmul.mubr.f32.vlgmr.msra.gmra.mxu1 %v78_v35  ;;  %1101 = vmatpush3.msra.mxu0 %v1541_v4 }
  0x55   :  { %1102 = vmatprep.subr.mxu0 %v1484_v0  ;;  %1135 = vmatprep.subr.mxu1 %v1484_v0 }
  0x56   :  { %1103 = vmatpush3.msra.mxu0 %v1543_v5  ;;  %1136 = vmatpush3.msra.mxu1 %v1541_v4 }
  0x57   :  { %1104 = vmatprep.subr.mxu0 %v1484_v0  ;;  %1137 = vmatprep.subr.mxu1 %v1484_v0 }
  0x58   :  { %1105 = vmatpush3.msra.mxu0 %v1547_v7  ;;  %1138 = vmatpush3.msra.mxu1 %v1543_v5 }
  0x59   :  { %1106 = vmatprep.subr.mxu0 %v1484_v0  ;;  %1139 = vmatprep.subr.mxu1 %v1484_v0 }
  0x5a   :  { %1107 = vmatpush3.msra.mxu0 %v1551_v9  ;;  %1140 = vmatpush3.msra.mxu1 %v1547_v7 }
  0x5b   :  { %1108 = vmatprep.subr.mxu0 %v1484_v0  ;;  %1141 = vmatprep.subr.mxu1 %v1484_v0 }
  0x5c   :  { %1109 = vmatpush3.msra.mxu0 %v1555_v11  ;;  %1142 = vmatpush3.msra.mxu1 %v1551_v9 }
  0x5d   :  { %1110 = vmatprep.subr.mxu0 %v1484_v0  ;;  %1143 = vmatprep.subr.mxu1 %v1484_v0 }
  0x5e   :  { %1111 = vmatpush3.msra.mxu0 %v1559_v13  ;;  %1144 = vmatpush3.msra.mxu1 %v1555_v11 }
  0x5f   :  { %1112 = vmatprep.subr.mxu0 %v1484_v0  ;;  %1145 = vmatprep.subr.mxu1 %v1484_v0 }
  0x60   :  { %1113 = vmatpush3.msra.mxu0 %v1563_v15  ;;  %1146 = vmatpush3.msra.mxu1 %v1559_v13 }
  0x61   :  { %1114 = vmatprep.subr.mxu0 %v1484_v0  ;;  %1147 = vmatprep.subr.mxu1 %v1484_v0 }
  0x62   :  { %1115 = vmatpush3.msra.mxu0 %v1567_v17  ;;  %1148 = vmatpush3.msra.mxu1 %v1563_v15 }
  0x63   :  { %1116 = vmatprep.subr.mxu0 %v1484_v0  ;;  %1149 = vmatprep.subr.mxu1 %v1484_v0 }
  0x64   :  { %1117 = vmatpush3.msra.mxu0 %v1571_v19  ;;  %1150 = vmatpush3.msra.mxu1 %v1567_v17 }
  0x65   :  { %1118 = vmatprep.subr.mxu0 %v1484_v0  ;;  %1151 = vmatprep.subr.mxu1 %v1484_v0 }
  0x66   :  { %1119 = vmatpush3.msra.mxu0 %v1575_v21  ;;  %1152 = vmatpush3.msra.mxu1 %v1571_v19 }
  0x67   :  { %1120 = vmatprep.subr.mxu0 %v1484_v0  ;;  %1153 = vmatprep.subr.mxu1 %v1484_v0 }
  0x68   :  { %1121 = vmatpush3.msra.mxu0 %v1580_v24  ;;  %1154 = vmatpush3.msra.mxu1 %v1575_v21 }
  0x69   :  { %1122 = vmatprep.subr.mxu0 %v1484_v0  ;;  %1155 = vmatprep.subr.mxu1 %v1484_v0 }
  0x6a   :  { %1123 = vmatpush3.msra.mxu0 %v1583_v26  ;;  %1156 = vmatpush3.msra.mxu1 %v1580_v24 }
  0x6b   :  { %1124 = vmatprep.subr.mxu0 %v1484_v0  ;;  %1157 = vmatprep.subr.mxu1 %v1484_v0 }
  0x6c   :  { %1125 = vmatpush3.msra.mxu0 %v1587_v28  ;;  %1158 = vmatpush3.msra.mxu1 %v1583_v26 }
  0x6d   :  { %1126 = vmatprep.subr.mxu0 %v1484_v0  ;;  %1159 = vmatprep.subr.mxu1 %v1484_v0 }
  0x6e   :  { %1127 = vmatpush3.msra.mxu0 %v1591_v30  ;;  %1160 = vmatpush3.msra.mxu1 %v1587_v28 }
  0x6f   :  { %1128 = vmatprep.subr.mxu0 %v1484_v0  ;;  %1161 = vmatprep.subr.mxu1 %v1484_v0 }
  0x70   :  { %1129 = vmatpush3.msra.mxu0 %v1595_v32  ;;  %1162 = vmatpush3.msra.mxu1 %v1591_v30 }
  0x71   :  { %1130 = vmatprep.subr.mxu0 %v1484_v0  ;;  %1163 = vmatprep.subr.mxu1 %v1484_v0 }
  0x72   :  { %1131 = vmatpush3.msra.mxu0 %v1599_v34  ;;  %1164 = vmatpush3.msra.mxu1 %v1595_v32 }
  0x73   :  { %1165 = vmatprep.subr.mxu1 %v1484_v0  ;;  %1167 = vmatprep.mubr.msk.f32.mxu1 %vm1485_vm0, %v1484_v0 }
  0x74   :  { %1166 = vmatpush3.msra.mxu1 %v1599_v34  ;;  %1170 = vmatprep.subr.mxu0 %v1484_v0 }
  0x75   :  { %1205 = vmatprep.subr.mxu1 %v1484_v0  ;;  %1056 = vmatprep.mubr.f32.mxu0 %v82_v36 }
  0x76   :  { %1057 = vmatmul.mubr.f32.gmra.mxu0 %v83_v37 }
  0x77   :  { %1059 = vmatprep.mubr.f32.mxu0 %v84_v38 }
  0x7a   :  { %1060 = vmatmul.mubr.f32.gmra.mxu0 %v85_v39 }
  0x7b   :  { %1062 = vmatprep.mubr.f32.mxu0 %v86_v40 }
  0x7e   :  { %1063 = vmatmul.mubr.f32.gmra.mxu0 %v87_v41 }
  0x7f   :  { %1132 = vmatprep.mubr.msk.f32.mxu0 %vm1485_vm0, %v1484_v0 }
 0x113   :  { %v1055_v42 = vpop.f32.mrf.mxu0 }
 0x114   :  { %v308_v45 = vpop.f32.mrf.mxu1  ;;  %v183_v56 = vadd.f32 %v1055_v42, %v1677_v43 }
 0x115   :  { %v177_v44 = vpop.f32.mrf.mxu0 }
 0x116   :  { %v178_v46 = vadd.f32 %v1677_v43, %v177_v44  ;;  %v1099_v47 = vpop.f32.mrf.mxu1 }
 0x118   :  { %v312_v48 = vadd.f32 %v308_v45, %v178_v46 }
 0x11a   :  { %1354 = vtanh.f32 %v312_v48 }
 0x127   :  { %v1355_v49 = vpop.eup %1354 }
 0x128   :  { %314 = vst [vmem:[#allocation11] sm:$0xff] %v1355_v49  ;;  %1133 = vmatmul.mubr.f32.vlgmr.msra.gmra.mxu0 %v1355_v49 }
 0x129   :  { %1171 = vmatpush3.msra.mxu0 %v1541_v4  ;;  %1202 = vmatprep.mubr.msk.f32.mxu0 %vm1485_vm0, %v1484_v0 }
 0x12a   :  { %1172 = vmatprep.subr.mxu0 %v1484_v0 }
 0x12b   :  { %1173 = vmatpush3.msra.mxu0 %v1543_v5 }
 0x12c   :  { %1174 = vmatprep.subr.mxu0 %v1484_v0 }
 0x12d   :  { %1175 = vmatpush3.msra.mxu0 %v1547_v7 }
 0x12e   :  { %1176 = vmatprep.subr.mxu0 %v1484_v0 }
 0x12f   :  { %1177 = vmatpush3.msra.mxu0 %v1551_v9 }
 0x130   :  { %1178 = vmatprep.subr.mxu0 %v1484_v0 }
 0x131   :  { %1179 = vmatpush3.msra.mxu0 %v1555_v11 }
 0x132   :  { %1180 = vmatprep.subr.mxu0 %v1484_v0 }
 0x133   :  { %1181 = vmatpush3.msra.mxu0 %v1559_v13 }
 0x134   :  { %1182 = vmatprep.subr.mxu0 %v1484_v0 }
 0x135   :  { %1183 = vmatpush3.msra.mxu0 %v1563_v15 }
 0x136   :  { %1184 = vmatprep.subr.mxu0 %v1484_v0  ;;  %v1714_v50 = vpop.f32.mrf.mxu0 }
 0x137   :  { %1185 = vmatpush3.msra.mxu0 %v1567_v17  ;;  %v193_v3 = vadd.f32 %v1714_v50, %v1677_v43 }
 0x138   :  { %1186 = vmatprep.subr.mxu0 %v1484_v0  ;;  %v187_v51 = vpop.f32.mrf.mxu0 }
 0x139   :  { %1187 = vmatpush3.msra.mxu0 %v1571_v19  ;;  %v188_v61 = vadd.f32 %v1677_v43, %v187_v51 }
 0x13a   :  { %1188 = vmatprep.subr.mxu0 %v1484_v0  ;;  %v1716_v52 = vpop.f32.mrf.mxu0 }
 0x13b   :  { %1189 = vmatpush3.msra.mxu0 %v1575_v21 }
 0x13c   :  { %1190 = vmatprep.subr.mxu0 %v1484_v0  ;;  %v1718_v53 = vpop.f32.mrf.mxu0 }
 0x13d   :  { %1191 = vmatpush3.msra.mxu0 %v1580_v24  ;;  %v198_v14 = vadd.f32 %v1677_v43, %v1718_v53 }
 0x13e   :  { %1192 = vmatprep.subr.mxu0 %v1484_v0  ;;  %v1720_v54 = vpop.f32.mrf.mxu0 }
 0x13f   :  { %1193 = vmatpush3.msra.mxu0 %v1583_v26 }
 0x140   :  { %1194 = vmatprep.subr.mxu0 %v1484_v0  ;;  %v1722_v55 = vpop.f32.mrf.mxu0 }
 0x141   :  { %1195 = vmatpush3.msra.mxu0 %v1587_v28 }
 0x142   :  { %1196 = vmatprep.subr.mxu0 %v1484_v0 }
 0x143   :  { %1197 = vmatpush3.msra.mxu0 %v1591_v30 }
 0x144   :  { %1198 = vmatprep.subr.mxu0 %v1484_v0 }
 0x145   :  { %1199 = vmatpush3.msra.mxu0 %v1595_v32 }
 0x146   :  { %1200 = vmatprep.subr.mxu0 %v1484_v0 }
 0x147   :  { %1201 = vmatpush3.msra.mxu0 %v1599_v34 }
 0x148   :  { %1240 = vmatprep.subr.mxu0 %v1484_v0 }
 0x1e8   :  { %v383_v57 = vpop.f32.mrf.mxu0 }
 0x1e9   :  { %v387_v58 = vadd.f32 %v383_v57, %v183_v56 }
 0x1ea   :  { %v1134_v59 = vpop.f32.mrf.mxu0 }
 0x1eb   :  { %1356 = vtanh.f32 %v387_v58 }
 0x1f8   :  { %v1357_v60 = vpop.eup %1356 }
 0x1f9   :  { %389 = vst [vmem:[#allocation11 + $0x8] sm:$0xff] %v1357_v60  ;;  %1168 = vmatmul.mubr.f32.vlgmr.msra.gmra.mxu1 %v1357_v60 }
 0x1fa   :  { %1206 = vmatpush3.msra.mxu1 %v1541_v4  ;;  %1237 = vmatprep.mubr.msk.f32.mxu1 %vm1485_vm0, %v1484_v0 }
 0x1fb   :  { %1207 = vmatprep.subr.mxu1 %v1484_v0 }
 0x1fc   :  { %1208 = vmatpush3.msra.mxu1 %v1543_v5 }
 0x1fd   :  { %1209 = vmatprep.subr.mxu1 %v1484_v0 }
 0x1fe   :  { %1210 = vmatpush3.msra.mxu1 %v1547_v7 }
 0x1ff   :  { %1211 = vmatprep.subr.mxu1 %v1484_v0 }
 0x200   :  { %1212 = vmatpush3.msra.mxu1 %v1551_v9 }
 0x201   :  { %1213 = vmatprep.subr.mxu1 %v1484_v0 }
 0x202   :  { %1214 = vmatpush3.msra.mxu1 %v1555_v11 }
 0x203   :  { %1215 = vmatprep.subr.mxu1 %v1484_v0 }
 0x204   :  { %1216 = vmatpush3.msra.mxu1 %v1559_v13 }
 0x205   :  { %1217 = vmatprep.subr.mxu1 %v1484_v0 }
 0x206   :  { %1218 = vmatpush3.msra.mxu1 %v1563_v15 }
 0x207   :  { %1219 = vmatprep.subr.mxu1 %v1484_v0 }
 0x208   :  { %1220 = vmatpush3.msra.mxu1 %v1567_v17 }
 0x209   :  { %1221 = vmatprep.subr.mxu1 %v1484_v0 }
 0x20a   :  { %1222 = vmatpush3.msra.mxu1 %v1571_v19 }
 0x20b   :  { %1223 = vmatprep.subr.mxu1 %v1484_v0 }
 0x20c   :  { %1224 = vmatpush3.msra.mxu1 %v1575_v21 }
 0x20d   :  { %1225 = vmatprep.subr.mxu1 %v1484_v0 }
 0x20e   :  { %1226 = vmatpush3.msra.mxu1 %v1580_v24 }
 0x20f   :  { %1227 = vmatprep.subr.mxu1 %v1484_v0 }
 0x210   :  { %1228 = vmatpush3.msra.mxu1 %v1583_v26 }
 0x211   :  { %1229 = vmatprep.subr.mxu1 %v1484_v0 }
 0x212   :  { %1230 = vmatpush3.msra.mxu1 %v1587_v28 }
 0x213   :  { %1231 = vmatprep.subr.mxu1 %v1484_v0 }
 0x214   :  { %1232 = vmatpush3.msra.mxu1 %v1591_v30 }
 0x215   :  { %1233 = vmatprep.subr.mxu1 %v1484_v0 }
 0x216   :  { %1234 = vmatpush3.msra.mxu1 %v1595_v32 }
 0x217   :  { %1235 = vmatprep.subr.mxu1 %v1484_v0 }
 0x218   :  { %1236 = vmatpush3.msra.mxu1 %v1599_v34 }
 0x219   :  { %1275 = vmatprep.subr.mxu1 %v1484_v0 }
 0x2b9   :  { %v458_v62 = vpop.f32.mrf.mxu1 }
 0x2ba   :  { %v462_v63 = vadd.f32 %v458_v62, %v188_v61 }
 0x2bb   :  { %v1169_v1 = vpop.f32.mrf.mxu1 }
 0x2bc   :  { %1358 = vtanh.f32 %v462_v63 }
 0x2c9   :  { %v1359_v2 = vpop.eup %1358 }
 0x2ca   :  { %464 = vst [vmem:[#allocation11 + $0x10] sm:$0xff] %v1359_v2  ;;  %1203 = vmatmul.mubr.f32.vlgmr.msra.gmra.mxu0 %v1359_v2 }
 0x2cb   :  { %1241 = vmatpush3.msra.mxu0 %v1541_v4  ;;  %1272 = vmatprep.mubr.msk.f32.mxu0 %vm1485_vm0, %v1484_v0 }
 0x2cc   :  { %1242 = vmatprep.subr.mxu0 %v1484_v0 }
 0x2cd   :  { %1243 = vmatpush3.msra.mxu0 %v1543_v5 }
 0x2ce   :  { %1244 = vmatprep.subr.mxu0 %v1484_v0 }
 0x2cf   :  { %1245 = vmatpush3.msra.mxu0 %v1547_v7 }
 0x2d0   :  { %1246 = vmatprep.subr.mxu0 %v1484_v0 }
 0x2d1   :  { %1247 = vmatpush3.msra.mxu0 %v1551_v9 }
 0x2d2   :  { %1248 = vmatprep.subr.mxu0 %v1484_v0 }
 0x2d3   :  { %1249 = vmatpush3.msra.mxu0 %v1555_v11 }
 0x2d4   :  { %1250 = vmatprep.subr.mxu0 %v1484_v0 }
 0x2d5   :  { %1251 = vmatpush3.msra.mxu0 %v1559_v13 }
 0x2d6   :  { %1252 = vmatprep.subr.mxu0 %v1484_v0 }
 0x2d7   :  { %1253 = vmatpush3.msra.mxu0 %v1563_v15 }
 0x2d8   :  { %1254 = vmatprep.subr.mxu0 %v1484_v0 }
 0x2d9   :  { %1255 = vmatpush3.msra.mxu0 %v1567_v17 }
 0x2da   :  { %1256 = vmatprep.subr.mxu0 %v1484_v0 }
 0x2db   :  { %1257 = vmatpush3.msra.mxu0 %v1571_v19 }
 0x2dc   :  { %1258 = vmatprep.subr.mxu0 %v1484_v0 }
 0x2dd   :  { %1259 = vmatpush3.msra.mxu0 %v1575_v21 }
 0x2de   :  { %1260 = vmatprep.subr.mxu0 %v1484_v0 }
 0x2df   :  { %1261 = vmatpush3.msra.mxu0 %v1580_v24 }
 0x2e0   :  { %1262 = vmatprep.subr.mxu0 %v1484_v0 }
 0x2e1   :  { %1263 = vmatpush3.msra.mxu0 %v1583_v26 }
 0x2e2   :  { %1264 = vmatprep.subr.mxu0 %v1484_v0 }
 0x2e3   :  { %1265 = vmatpush3.msra.mxu0 %v1587_v28 }
 0x2e4   :  { %1266 = vmatprep.subr.mxu0 %v1484_v0 }
 0x2e5   :  { %1267 = vmatpush3.msra.mxu0 %v1591_v30 }
 0x2e6   :  { %1268 = vmatprep.subr.mxu0 %v1484_v0 }
 0x2e7   :  { %1269 = vmatpush3.msra.mxu0 %v1595_v32 }
 0x2e8   :  { %1270 = vmatprep.subr.mxu0 %v1484_v0 }
 0x2e9   :  { %1271 = vmatpush3.msra.mxu0 %v1599_v34 }
 0x2ea   :  { %1310 = vmatprep.subr.mxu0 %v1484_v0 }
 0x38a   :  { %v533_v6 = vpop.f32.mrf.mxu0 }
 0x38b   :  { %v537_v8 = vadd.f32 %v533_v6, %v193_v3 }
 0x38c   :  { %v1204_v10 = vpop.f32.mrf.mxu0 }
 0x38d   :  { %1360 = vtanh.f32 %v537_v8 }
 0x39a   :  { %v1361_v12 = vpop.eup %1360 }
 0x39b   :  { %539 = vst [vmem:[#allocation11 + $0x18] sm:$0xff] %v1361_v12  ;;  %1238 = vmatmul.mubr.f32.vlgmr.msra.gmra.mxu1 %v1361_v12 }
 0x39c   :  { %1276 = vmatpush3.msra.mxu1 %v1541_v4  ;;  %1307 = vmatprep.mubr.msk.f32.mxu1 %vm1485_vm0, %v1484_v0 }
 0x39d   :  { %1277 = vmatprep.subr.mxu1 %v1484_v0 }
 0x39e   :  { %1278 = vmatpush3.msra.mxu1 %v1543_v5 }
 0x39f   :  { %1279 = vmatprep.subr.mxu1 %v1484_v0 }
 0x3a0   :  { %1280 = vmatpush3.msra.mxu1 %v1547_v7 }
 0x3a1   :  { %1281 = vmatprep.subr.mxu1 %v1484_v0 }
 0x3a2   :  { %1282 = vmatpush3.msra.mxu1 %v1551_v9 }
 0x3a3   :  { %1283 = vmatprep.subr.mxu1 %v1484_v0 }
 0x3a4   :  { %1284 = vmatpush3.msra.mxu1 %v1555_v11 }
 0x3a5   :  { %1285 = vmatprep.subr.mxu1 %v1484_v0 }
 0x3a6   :  { %1286 = vmatpush3.msra.mxu1 %v1559_v13 }
 0x3a7   :  { %1287 = vmatprep.subr.mxu1 %v1484_v0 }
 0x3a8   :  { %1288 = vmatpush3.msra.mxu1 %v1563_v15 }
 0x3a9   :  { %1289 = vmatprep.subr.mxu1 %v1484_v0 }
 0x3aa   :  { %1290 = vmatpush3.msra.mxu1 %v1567_v17 }
 0x3ab   :  { %1291 = vmatprep.subr.mxu1 %v1484_v0 }
 0x3ac   :  { %1292 = vmatpush3.msra.mxu1 %v1571_v19 }
 0x3ad   :  { %1293 = vmatprep.subr.mxu1 %v1484_v0 }
 0x3ae   :  { %1294 = vmatpush3.msra.mxu1 %v1575_v21 }
 0x3af   :  { %1295 = vmatprep.subr.mxu1 %v1484_v0 }
 0x3b0   :  { %1296 = vmatpush3.msra.mxu1 %v1580_v24 }
 0x3b1   :  { %1297 = vmatprep.subr.mxu1 %v1484_v0 }
 0x3b2   :  { %1298 = vmatpush3.msra.mxu1 %v1583_v26 }
 0x3b3   :  { %1299 = vmatprep.subr.mxu1 %v1484_v0 }
 0x3b4   :  { %1300 = vmatpush3.msra.mxu1 %v1587_v28 }
 0x3b5   :  { %1301 = vmatprep.subr.mxu1 %v1484_v0 }
 0x3b6   :  { %1302 = vmatpush3.msra.mxu1 %v1591_v30 }
 0x3b7   :  { %1303 = vmatprep.subr.mxu1 %v1484_v0 }
 0x3b8   :  { %1304 = vmatpush3.msra.mxu1 %v1595_v32 }
 0x3b9   :  { %1305 = vmatprep.subr.mxu1 %v1484_v0 }
 0x3ba   :  { %1306 = vmatpush3.msra.mxu1 %v1599_v34 }
 0x45b   :  { %v608_v16 = vpop.f32.mrf.mxu1 }
 0x45c   :  { %v612_v18 = vadd.f32 %v608_v16, %v198_v14 }
 0x45d   :  { %v1239_v20 = vpop.f32.mrf.mxu1 }
 0x45e   :  { %1362 = vtanh.f32 %v612_v18 }
 0x46b   :  { %v1363_v22 = vpop.eup %1362 }
 0x46c   :  { %614 = vst [vmem:[#allocation11 + $0x20] sm:$0xff] %v1363_v22  ;;  %1273 = vmatmul.mubr.f32.vlgmr.msra.gmra.mxu0 %v1363_v22 }
 0x46d   :  { %1311 = vmatpush3.msra.mxu0 %v1541_v4  ;;  %1342 = vmatprep.mubr.msk.f32.mxu0 %vm1485_vm0, %v1484_v0  ;;  %v203_v4 = vadd.f32 %v1716_v52, %v1677_v43 }
 0x46e   :  { %1312 = vmatprep.subr.mxu0 %v1484_v0 }
 0x46f   :  { %1313 = vmatpush3.msra.mxu0 %v1543_v5 }
 0x470   :  { %1314 = vmatprep.subr.mxu0 %v1484_v0 }
 0x471   :  { %1315 = vmatpush3.msra.mxu0 %v1547_v7 }
 0x472   :  { %1316 = vmatprep.subr.mxu0 %v1484_v0 }
 0x473   :  { %1317 = vmatpush3.msra.mxu0 %v1551_v9 }
 0x474   :  { %1318 = vmatprep.subr.mxu0 %v1484_v0 }
 0x475   :  { %1319 = vmatpush3.msra.mxu0 %v1555_v11 }
 0x476   :  { %1320 = vmatprep.subr.mxu0 %v1484_v0 }
 0x477   :  { %1321 = vmatpush3.msra.mxu0 %v1559_v13  ;;  %v208_v13 = vadd.f32 %v1677_v43, %v1722_v55 }
 0x478   :  { %1322 = vmatprep.subr.mxu0 %v1484_v0 }
 0x479   :  { %1323 = vmatpush3.msra.mxu0 %v1563_v15 }
 0x47a   :  { %1324 = vmatprep.subr.mxu0 %v1484_v0 }
 0x47b   :  { %1325 = vmatpush3.msra.mxu0 %v1567_v17 }
 0x47c   :  { %1326 = vmatprep.subr.mxu0 %v1484_v0 }
 0x47d   :  { %1327 = vmatpush3.msra.mxu0 %v1571_v19 }
 0x47e   :  { %1328 = vmatprep.subr.mxu0 %v1484_v0 }
 0x47f   :  { %1329 = vmatpush3.msra.mxu0 %v1575_v21  ;;  %v213_v21 = vadd.f32 %v1720_v54, %v1677_v43 }
 0x480   :  { %1330 = vmatprep.subr.mxu0 %v1484_v0 }
 0x481   :  { %1331 = vmatpush3.msra.mxu0 %v1580_v24 }
 0x482   :  { %1332 = vmatprep.subr.mxu0 %v1484_v0 }
 0x483   :  { %1333 = vmatpush3.msra.mxu0 %v1583_v26 }
 0x484   :  { %1334 = vmatprep.subr.mxu0 %v1484_v0 }
 0x485   :  { %1335 = vmatpush3.msra.mxu0 %v1587_v28 }
 0x486   :  { %1336 = vmatprep.subr.mxu0 %v1484_v0 }
 0x487   :  { %1337 = vmatpush3.msra.mxu0 %v1591_v30 }
 0x488   :  { %1338 = vmatprep.subr.mxu0 %v1484_v0 }
 0x489   :  { %1339 = vmatpush3.msra.mxu0 %v1595_v32 }
 0x48a   :  { %1340 = vmatprep.subr.mxu0 %v1484_v0 }
 0x48b   :  { %1341 = vmatpush3.msra.mxu0 %v1599_v34 }
 0x52c   :  { %v683_v5 = vpop.f32.mrf.mxu0 }
 0x52d   :  { %v687_v7 = vadd.f32 %v683_v5, %v203_v4 }
 0x52e   :  { %v1274_v9 = vpop.f32.mrf.mxu0 }
 0x52f   :  { %1364 = vtanh.f32 %v687_v7 }
 0x53c   :  { %v1365_v11 = vpop.eup %1364 }
 0x53d   :  { %689 = vst [vmem:[#allocation11 + $0x28] sm:$0xff] %v1365_v11  ;;  %1308 = vmatmul.mubr.f32.vlgmr.msra.gmra.mxu1 %v1365_v11 }
 0x5fd   :  { %v758_v15 = vpop.f32.mrf.mxu1 }
 0x5fe   :  { %v762_v17 = vadd.f32 %v758_v15, %v208_v13 }
 0x5ff   :  { %v1309_v19 = vpop.f32.mrf.mxu1 }
 0x600   :  { %1366 = vtanh.f32 %v762_v17 }
 0x60d   :  { %v1367_v0 = vpop.eup %1366 }
 0x60e   :  { %764 = vst [vmem:[#allocation11 + $0x30] sm:$0xff] %v1367_v0  ;;  %1343 = vmatmul.mubr.f32.vlgmr.msra.gmra.mxu0 %v1367_v0 }
 0x6ce   :  { %v833_v23 = vpop.f32.mrf.mxu0 }
 0x6cf   :  { %v837_v24 = vadd.f32 %v833_v23, %v213_v21 }
 0x6d0   :  { %v1344_v25 = vpop.f32.mrf.mxu0 }
 0x6d1   :  { %1368 = vtanh.f32 %v837_v24 }
 0x6de   :  { %v1369_v26 = vpop.eup %1368 }
 0x6df   :  { %839 = vst [vmem:[#allocation11 + $0x38] sm:$0xff] %v1369_v26 }
 0x6e0   :  { %1461 = shalt.err (!%p1458_p10)
}
 0x6e1   :  { %852 = dma.vmem_to_hbm [thread:$0]  %s847_s13, 1024, %s1881_s5, [#allocation5], %s1480_s23, %s1480_s23, %s1481_s24  }
 0x6e2   :  { %1476 = dma.done.wait [#allocation5], 1024  }
 0x6e3   :  { %1477 = vsyncadd [#allocation5], 4294966272 }
 0x6e4   :  { %856 = vsyncpa [#allocation4], 1 }
 0x6e5   :  { %857 = vsyncpa [#allocation7], 1 }
 0x6e6   :  { %858 = vsyncpa [#allocation10], 1 }
 0x6e7   :  { %859 = vsyncpa [#allocation5], 1 }

</bundles_post_ra>
